<compile_context>
chip_gen: v7x
topology: tpu7x:2x2x1
jax: 0.10.0
libtpu: 0.0.40
codegen_flags: <defaults>
</compile_context>

<pallas_src>
import numpy as np
import jax
import jax.numpy as jnp
from jax.experimental import pallas as pl
from jax.experimental.pallas import tpu as pltpu

STATE_SIZE = 33
ACTION_SIZE = 4
PACKED_IN = STATE_SIZE + ACTION_SIZE  # 37: packed [state | action]
HIDDEN = 128


def _round_up(x, m):
    return ((x + m - 1) // m) * m


def _default_fuse_action():
    """Fuse the action branch into a 256-wide fc1 matmul only on 256-wide MXUs."""
    try:
        kind = jax.devices()[0].device_kind.lower()
    except Exception:
        return True
    return ("v6" in kind) or ("v7" in kind)


# ----------------------------------------------------------------------------
# Kernels
# ----------------------------------------------------------------------------
def critic_kernel_fused(x_ref, w_in_ref, b1_ref, w2s_ref, b2_ref, w3_ref,
                        b3_ref, out_ref):
    """v6e/v7x: fc1 and the action branch share one N=256 MXU matmul."""
    f32 = jnp.float32
    cdt = w_in_ref.dtype  # MXU compute dtype (f32 or bf16); accumulation is f32.

    x = x_ref[...].astype(cdt)                                        # (TM, 37)
    # Block-diagonal weight: cols 0-127 = state@W1, cols 128-255 = action@W2a.
    z = jnp.dot(x, w_in_ref[...], preferred_element_type=f32)         # (TM, 256)

    xs = jnp.maximum(z[:, :HIDDEN] + b1_ref[...], 0.0)                # fc1 + relu
    h = jnp.dot(xs.astype(cdt), w2s_ref[...], preferred_element_type=f32)
    h = jnp.maximum(h + z[:, HIDDEN:] + b2_ref[...], 0.0)             # fc2 + relu

    # fc3 (N=1) as VPU multiply + lane reduction (XLU); bias is an SMEM scalar.
    q = jnp.sum(h * w3_ref[...], axis=-1, keepdims=True) + b3_ref[0, 0]
    out_ref[...] = q


def critic_kernel_split(x_ref, w1p_ref, b1_ref, w2s_ref, w2a_ref, b2_ref,
                        w3_ref, b3_ref, out_ref):
    """v5e: keep fc1 at N=128; action branch = 4 unrolled VPU broadcast-FMAs."""
    f32 = jnp.float32
    cdt = w1p_ref.dtype

    x = x_ref[...]                                                     # (TM, 37)
    # w1p's action rows are zero, so the packed input can be used directly.
    xs = jnp.dot(x.astype(cdt), w1p_ref[...], preferred_element_type=f32)
    xs = jnp.maximum(xs + b1_ref[...], 0.0)                            # fc1 + relu

    h = jnp.dot(xs.astype(cdt), w2s_ref[...], preferred_element_type=f32)
    h = h + b2_ref[...]
    a = x.astype(f32)
    w2a = w2a_ref[...]
    for k in range(ACTION_SIZE):  # static unroll; a K=4 MXU pass would be wasteful
        h = h + a[:, STATE_SIZE + k:STATE_SIZE + k + 1] * w2a[k:k + 1, :]
    h = jnp.maximum(h, 0.0)                                            # fc2 + relu

    q = jnp.sum(h * w3_ref[...], axis=-1, keepdims=True) + b3_ref[0, 0]
    out_ref[...] = q


# ----------------------------------------------------------------------------
# Parameter construction / packing
# ----------------------------------------------------------------------------
def init_params(key):
    """f32 params mirroring Critic.reset_parameters / nn.Linear defaults.

    hidden_init uses weight.size()[0] == out_features (=128) for the fan, so
    fc1/fc2 weights ~ U(-sqrt(1/128), sqrt(1/128)); fc3 weight ~ U(-0.003, 0.003).
    Biases keep PyTorch's default U(-1/sqrt(fan_in), 1/sqrt(fan_in)).
    Weights are stored transposed: (in_features, out_features), so y = x @ W + b.
    """
    ks = jax.random.split(key, 6)
    lim = np.sqrt(1.0 / HIDDEN)

    w1 = jax.random.uniform(ks[0], (STATE_SIZE, HIDDEN), jnp.float32, -lim, lim)
    b1 = jax.random.uniform(ks[1], (1, HIDDEN), jnp.float32,
                            -1.0 / np.sqrt(STATE_SIZE), 1.0 / np.sqrt(STATE_SIZE))

    w2 = jax.random.uniform(ks[2], (HIDDEN + ACTION_SIZE, HIDDEN), jnp.float32,
                            -lim, lim)
    b2 = jax.random.uniform(ks[3], (1, HIDDEN), jnp.float32,
                            -1.0 / np.sqrt(HIDDEN + ACTION_SIZE),
                            1.0 / np.sqrt(HIDDEN + ACTION_SIZE))

    w3_row = jax.random.uniform(ks[4], (1, HIDDEN), jnp.float32, -0.003, 0.003)
    b3 = jax.random.uniform(ks[5], (1, 1), jnp.float32,
                            -1.0 / np.sqrt(HIDDEN), 1.0 / np.sqrt(HIDDEN))

    return {"w1": w1, "b1": b1, "w2": w2, "b2": b2, "w3_row": w3_row, "b3": b3}


def prepare_params(params, *, compute_dtype=jnp.float32, fuse_action=None):
    """One-time packing of the base f32 params into kernel operands."""
    if fuse_action is None:
        fuse_action = _default_fuse_action()
    cdt = jnp.dtype(compute_dtype)

    w1, b1 = params["w1"], params["b1"]
    w2, b2 = params["w2"], params["b2"]
    w3_row, b3 = params["w3_row"], params["b3"]
    w2s, w2a = w2[:HIDDEN], w2[HIDDEN:]

    if fuse_action:
        # Block-diagonal (37, 256): [[W1, 0], [0, W2a]].  One MXU pass computes
        # both the fc1 pre-activation and the action contribution to fc2.
        w_in = jnp.zeros((PACKED_IN, 2 * HIDDEN), jnp.float32)
        w_in = w_in.at[:STATE_SIZE, :HIDDEN].set(w1)
        w_in = w_in.at[STATE_SIZE:, HIDDEN:].set(w2a)
        mats = (w_in.astype(cdt), b1, w2s.astype(cdt), b2, w3_row)
    else:
        # Zero-pad W1 to the packed input width so the kernel never slices the
        # matmul LHS; the action branch stays on the VPU.
        w1p = jnp.zeros((PACKED_IN, HIDDEN), jnp.float32).at[:STATE_SIZE].set(w1)
        mats = (w1p.astype(cdt), b1, w2s.astype(cdt), w2a, b2, w3_row)

    in_dtype = jnp.bfloat16 if cdt == jnp.dtype(jnp.bfloat16) else jnp.float32
    return {"fuse_action": bool(fuse_action), "in_dtype": in_dtype,
            "mats": mats, "b3": b3}


# ----------------------------------------------------------------------------
# Wrapper
# ----------------------------------------------------------------------------
def critic_forward(state, action, prepared, *, block_b=4096):
    """state: (B, 33) f32, action: (B, 4) f32 -> (B, 1) f32."""
    B = state.shape[0]

    # Pack [state | action] into one activation array (single DMA stream, one
    # lane-padded VMEM buffer instead of two).  bf16 when the MXU weights are.
    x = jnp.concatenate([state, action], axis=1).astype(prepared["in_dtype"])

    # Batch tile: >= 2 grid steps when B >= 256 so v7x's two TensorCores both
    # get work; capped at block_b to bound VMEM; no wrapper-side padding.
    if B < 256:
        TM = B                                   # single (possibly partial) block
    else:
        TM = min(block_b, _round_up(pl.cdiv(B, 2), 8))
    grid = (pl.cdiv(B, TM),)

    mats = prepared["mats"]
    b3 = prepared["b3"]
    kernel = critic_kernel_fused if prepared["fuse_action"] else critic_kernel_split

    weight_bytes = (sum(int(np.prod(m.shape)) * m.dtype.itemsize for m in mats)
                    + int(np.prod(b3.shape)) * b3.dtype.itemsize)
    cost = pl.CostEstimate(
        flops=2 * B * (STATE_SIZE * HIDDEN + HIDDEN * HIDDEN
                       + ACTION_SIZE * HIDDEN + HIDDEN),
        transcendentals=0,
        bytes_accessed=int(x.size) * x.dtype.itemsize + B * 4 + weight_bytes,
    )

    def fix_spec(m):
        return pl.BlockSpec(m.shape, lambda i: (0, 0))

    in_specs = ([pl.BlockSpec((TM, PACKED_IN), lambda i: (i, 0))]      # packed acts
                + [fix_spec(m) for m in mats]                          # weights
                + [pl.BlockSpec(memory_space=pltpu.MemorySpace.SMEM)]) # b3 scalar

    out = pl.pallas_call(
        kernel,
        out_shape=jax.ShapeDtypeStruct((B, 1), jnp.float32),
        grid=grid,
        in_specs=in_specs,
        out_specs=pl.BlockSpec((TM, 1), lambda i: (i, 0)),
        compiler_params=pltpu.CompilerParams(
            dimension_semantics=("parallel",),
            vmem_limit_bytes=32 * 1024 * 1024),
        cost_estimate=cost,
    )(x, *mats, b3)

    return out


# ----------------------------------------------------------------------------
# Reference + self-test
# ----------------------------------------------------------------------------
def critic_reference(state, action, params):
    xs = jax.nn.relu(state @ params["w1"] + params["b1"])
    xcat = jnp.concatenate([xs, action], axis=1)
    h = jax.nn.relu(xcat @ params["w2"] + params["b2"])
    return h @ params["w3_row"].T + params["b3"]


if __name__ == "__main__":
    key = jax.random.PRNGKey(0)
    k_params, k_state, k_action = jax.random.split(key, 3)

    base_params = init_params(k_params)

    def check(B, compute_dtype, fuse_action, tol):
        ks, ka = jax.random.split(jax.random.fold_in(k_state, B), 2)
        state = jax.random.normal(ks, (B, STATE_SIZE), jnp.float32)
        action = jax.random.uniform(ka, (B, ACTION_SIZE), jnp.float32, -1.0, 1.0)
        prep = prepare_params(base_params, compute_dtype=compute_dtype,
                              fuse_action=fuse_action)
        q = jax.block_until_ready(critic_forward(state, action, prep))
        ref = critic_reference(state, action, base_params)
        np.testing.assert_allclose(np.asarray(q), np.asarray(ref),
                                   rtol=tol, atol=tol)

    default_fuse = _default_fuse_action()

    # 1) Small batch, f32, device-default kernel path: strict check.
    check(8, jnp.float32, default_fuse, 1e-5)
    # 2) Same batch, f32, the other kernel path (both variants must compile/run).
    check(8, jnp.float32, not default_fuse, 1e-5)
    # 3) Multi-step grid with a partial last block (no wrapper padding), bf16
    #    MXU weights + bf16 packed activations: looser tolerance.
    check(300, jnp.bfloat16, default_fuse, 2e-2)

    print("KERNEL_OK")
</pallas_src>

<mosaic_0001>
module attributes {stable_mosaic.version = 11 : i64} {
  func.func @critic_kernel_split(%arg0: i32, %arg1: memref<8x37xf32, #tpu.memory_space<vmem>>, %arg2: memref<37x128xf32, #tpu.memory_space<vmem>>, %arg3: memref<1x128xf32, #tpu.memory_space<vmem>>, %arg4: memref<128x128xf32, #tpu.memory_space<vmem>>, %arg5: memref<4x128xf32, #tpu.memory_space<vmem>>, %arg6: memref<1x128xf32, #tpu.memory_space<vmem>>, %arg7: memref<1x128xf32, #tpu.memory_space<vmem>>, %arg8: memref<1x1xf32, #tpu.memory_space<smem>>, %arg9: memref<8x1xf32, #tpu.memory_space<vmem>>) attributes {dimension_semantics = [#tpu.dimension_semantics<parallel>], iteration_bounds = array<i64: 1>, scalar_prefetch = 0 : i64, scratch_operands = 0 : i64, tpu.core_type = #tpu.core_type<tc>, window_params = [{transform_indices = @transform_0, window_bounds = array<i64: 8, 37>}, {pipeline_mode = #tpu.pipeline_mode<synchronous>, transform_indices = @transform_1, window_bounds = array<i64: 37, 128>}, {pipeline_mode = #tpu.pipeline_mode<synchronous>, transform_indices = @transform_2, window_bounds = array<i64: 1, 128>}, {pipeline_mode = #tpu.pipeline_mode<synchronous>, transform_indices = @transform_3, window_bounds = array<i64: 128, 128>}, {pipeline_mode = #tpu.pipeline_mode<synchronous>, transform_indices = @transform_4, window_bounds = array<i64: 4, 128>}, {pipeline_mode = #tpu.pipeline_mode<synchronous>, transform_indices = @transform_5, window_bounds = array<i64: 1, 128>}, {pipeline_mode = #tpu.pipeline_mode<synchronous>, transform_indices = @transform_6, window_bounds = array<i64: 1, 128>}, {transform_indices = @transform_7, window_bounds = array<i64: 1, 1>}, {transform_indices = @transform_8, window_bounds = array<i64: 8, 1>}]} {
    %c0 = arith.constant 0 : index
    %c0_0 = arith.constant 0 : index
    %0 = vector.load %arg1[%c0, %c0_0] : memref<8x37xf32, #tpu.memory_space<vmem>>, vector<8x37xf32>
    %c0_1 = arith.constant 0 : index
    %c0_2 = arith.constant 0 : index
    %1 = vector.load %arg2[%c0_1, %c0_2] : memref<37x128xf32, #tpu.memory_space<vmem>>, vector<37x128xf32>
    %cst = arith.constant dense<0.000000e+00> : vector<8x128xf32>
    %2 = tpu.matmul %0, %1, %cst {dimension_numbers = #tpu.dot_dimension_numbers<[1], [0], [0], [1], [0, 0, 1, 1], [], []>} : vector<8x37xf32>, vector<37x128xf32>, vector<8x128xf32> -> vector<8x128xf32>
    %c0_3 = arith.constant 0 : index
    %c0_4 = arith.constant 0 : index
    %3 = vector.load %arg3[%c0_3, %c0_4] : memref<1x128xf32, #tpu.memory_space<vmem>>, vector<1x128xf32>
    %4 = vector.broadcast %3 : vector<1x128xf32> to vector<8x128xf32>
    %5 = arith.addf %2, %4 : vector<8x128xf32>
    %cst_5 = arith.constant 0.000000e+00 : f32
    %6 = vector.broadcast %cst_5 : f32 to vector<8x128xf32>
    %7 = arith.maximumf %5, %6 : vector<8x128xf32>
    %c0_6 = arith.constant 0 : index
    %c0_7 = arith.constant 0 : index
    %8 = vector.load %arg4[%c0_6, %c0_7] : memref<128x128xf32, #tpu.memory_space<vmem>>, vector<128x128xf32>
    %cst_8 = arith.constant dense<0.000000e+00> : vector<8x128xf32>
    %9 = tpu.matmul %7, %8, %cst_8 {dimension_numbers = #tpu.dot_dimension_numbers<[1], [0], [0], [1], [0, 0, 1, 1], [], []>} : vector<8x128xf32>, vector<128x128xf32>, vector<8x128xf32> -> vector<8x128xf32>
    %c0_9 = arith.constant 0 : index
    %c0_10 = arith.constant 0 : index
    %10 = vector.load %arg6[%c0_9, %c0_10] : memref<1x128xf32, #tpu.memory_space<vmem>>, vector<1x128xf32>
    %11 = vector.broadcast %10 : vector<1x128xf32> to vector<8x128xf32>
    %12 = arith.addf %9, %11 : vector<8x128xf32>
    %c0_11 = arith.constant 0 : index
    %c0_12 = arith.constant 0 : index
    %13 = vector.load %arg5[%c0_11, %c0_12] : memref<4x128xf32, #tpu.memory_space<vmem>>, vector<4x128xf32>
    %14 = vector.extract_strided_slice %0 {offsets = [0, 33], sizes = [8, 1], strides = [1, 1]} : vector<8x37xf32> to vector<8x1xf32>
    %15 = vector.extract_strided_slice %13 {offsets = [0, 0], sizes = [1, 128], strides = [1, 1]} : vector<4x128xf32> to vector<1x128xf32>
    %16 = vector.broadcast %14 : vector<8x1xf32> to vector<8x128xf32>
    %17 = vector.broadcast %15 : vector<1x128xf32> to vector<8x128xf32>
    %18 = arith.mulf %16, %17 : vector<8x128xf32>
    %19 = arith.addf %12, %18 : vector<8x128xf32>
    %20 = vector.extract_strided_slice %0 {offsets = [0, 34], sizes = [8, 1], strides = [1, 1]} : vector<8x37xf32> to vector<8x1xf32>
    %21 = vector.extract_strided_slice %13 {offsets = [1, 0], sizes = [1, 128], strides = [1, 1]} : vector<4x128xf32> to vector<1x128xf32>
    %22 = vector.broadcast %20 : vector<8x1xf32> to vector<8x128xf32>
    %23 = vector.broadcast %21 : vector<1x128xf32> to vector<8x128xf32>
    %24 = arith.mulf %22, %23 : vector<8x128xf32>
    %25 = arith.addf %19, %24 : vector<8x128xf32>
    %26 = vector.extract_strided_slice %0 {offsets = [0, 35], sizes = [8, 1], strides = [1, 1]} : vector<8x37xf32> to vector<8x1xf32>
    %27 = vector.extract_strided_slice %13 {offsets = [2, 0], sizes = [1, 128], strides = [1, 1]} : vector<4x128xf32> to vector<1x128xf32>
    %28 = vector.broadcast %26 : vector<8x1xf32> to vector<8x128xf32>
    %29 = vector.broadcast %27 : vector<1x128xf32> to vector<8x128xf32>
    %30 = arith.mulf %28, %29 : vector<8x128xf32>
    %31 = arith.addf %25, %30 : vector<8x128xf32>
    %32 = vector.extract_strided_slice %0 {offsets = [0, 36], sizes = [8, 1], strides = [1, 1]} : vector<8x37xf32> to vector<8x1xf32>
    %33 = vector.extract_strided_slice %13 {offsets = [3, 0], sizes = [1, 128], strides = [1, 1]} : vector<4x128xf32> to vector<1x128xf32>
    %34 = vector.broadcast %32 : vector<8x1xf32> to vector<8x128xf32>
    %35 = vector.broadcast %33 : vector<1x128xf32> to vector<8x128xf32>
    %36 = arith.mulf %34, %35 : vector<8x128xf32>
    %37 = arith.addf %31, %36 : vector<8x128xf32>
    %cst_13 = arith.constant 0.000000e+00 : f32
    %38 = vector.broadcast %cst_13 : f32 to vector<8x128xf32>
    %39 = arith.maximumf %37, %38 : vector<8x128xf32>
    %c0_14 = arith.constant 0 : index
    %c0_15 = arith.constant 0 : index
    %40 = vector.load %arg7[%c0_14, %c0_15] : memref<1x128xf32, #tpu.memory_space<vmem>>, vector<1x128xf32>
    %41 = vector.broadcast %40 : vector<1x128xf32> to vector<8x128xf32>
    %42 = arith.mulf %39, %41 : vector<8x128xf32>
    %cst_16 = arith.constant dense<0.000000e+00> : vector<8xf32>
    %43 = vector.multi_reduction <add>, %42, %cst_16 [1] : vector<8x128xf32> to vector<8xf32>
    %44 = vector.shape_cast %43 : vector<8xf32> to vector<8x1xf32>
    %c0_17 = arith.constant 0 : index
    %c0_18 = arith.constant 0 : index
    %45 = memref.load %arg8[%c0_17, %c0_18] : memref<1x1xf32, #tpu.memory_space<smem>>
    %46 = vector.broadcast %45 : f32 to vector<8x1xf32>
    %47 = arith.addf %44, %46 : vector<8x1xf32>
    %c0_19 = arith.constant 0 : index
    %c0_20 = arith.constant 0 : index
    %48 = vector.load %arg9[%c0_19, %c0_20] : memref<8x1xf32, #tpu.memory_space<vmem>>, vector<8x1xf32>
    tpu.vector_store %arg9[%c0_19, %c0_20], %47 {strides = array<i32>} : memref<8x1xf32, #tpu.memory_space<vmem>>, vector<8x1xf32>,
    return
  }
  func.func @transform_0(%arg0: i32) -> (i32, i32) {
    %c0_i32 = arith.constant 0 : i32
    %c0_i32_0 = arith.constant 0 : i32
    return %arg0, %c0_i32 : i32, i32
  }
  func.func @transform_1(%arg0: i32) -> (i32, i32) {
    %c0_i32 = arith.constant 0 : i32
    %c0_i32_0 = arith.constant 0 : i32
    %c0_i32_1 = arith.constant 0 : i32
    return %c0_i32, %c0_i32_0 : i32, i32
  }
  func.func @transform_2(%arg0: i32) -> (i32, i32) {
    %c0_i32 = arith.constant 0 : i32
    %c0_i32_0 = arith.constant 0 : i32
    %c0_i32_1 = arith.constant 0 : i32
    return %c0_i32, %c0_i32_0 : i32, i32
  }
  func.func @transform_3(%arg0: i32) -> (i32, i32) {
    %c0_i32 = arith.constant 0 : i32
    %c0_i32_0 = arith.constant 0 : i32
    %c0_i32_1 = arith.constant 0 : i32
    return %c0_i32, %c0_i32_0 : i32, i32
  }
  func.func @transform_4(%arg0: i32) -> (i32, i32) {
    %c0_i32 = arith.constant 0 : i32
    %c0_i32_0 = arith.constant 0 : i32
    %c0_i32_1 = arith.constant 0 : i32
    return %c0_i32, %c0_i32_0 : i32, i32
  }
  func.func @transform_5(%arg0: i32) -> (i32, i32) {
    %c0_i32 = arith.constant 0 : i32
    %c0_i32_0 = arith.constant 0 : i32
    %c0_i32_1 = arith.constant 0 : i32
    return %c0_i32, %c0_i32_0 : i32, i32
  }
  func.func @transform_6(%arg0: i32) -> (i32, i32) {
    %c0_i32 = arith.constant 0 : i32
    %c0_i32_0 = arith.constant 0 : i32
    %c0_i32_1 = arith.constant 0 : i32
    return %c0_i32, %c0_i32_0 : i32, i32
  }
  func.func @transform_7(%arg0: i32) -> (i32, i32) {
    %c0_i32 = arith.constant 0 : i32
    %c0_i32_0 = arith.constant 0 : i32
    %c0_i32_1 = arith.constant 0 : i32
    return %c0_i32, %c0_i32_0 : i32, i32
  }
  func.func @transform_8(%arg0: i32) -> (i32, i32) {
    %c0_i32 = arith.constant 0 : i32
    %c0_i32_0 = arith.constant 0 : i32
    return %arg0, %c0_i32 : i32, i32
  }
}

</mosaic_0001>

<bundles_post_ra>
// kernel: tpu_custom_call.1
= control target key start
LH: loop header
LB: loop body
LE: loop exit
PB: predicated region body
PF: predicated region fallthrough
CT: control target
= control target key end

     0   :  { %14 = vsyncpa [#allocation4], 0  ;;  %s627_s0 = inlined_call_operand.hbm [shape: f32[8,37], index: 0, kind: input, shape index: {}]   ;;  %s628_s1 = inlined_call_operand.hbm [shape: f32[37,128], index: 1, kind: input, shape index: {}]   ;;  %s629_s2 = inlined_call_operand.vmem [shape: f32[1,128], index: 2, kind: input, shape index: {}]   ;;  %s630_s3 = inlined_call_operand.hbm [shape: f32[128,128], index: 3, kind: input, shape index: {}]   ;;  %s631_s4 = inlined_call_operand.vmem [shape: f32[4,128], index: 4, kind: input, shape index: {}]   ;;  %s632_s5 = inlined_call_operand.vmem [shape: f32[1,128], index: 5, kind: input, shape index: {}]   ;;  %s633_s6 = inlined_call_operand.vmem [shape: f32[1,128], index: 6, kind: input, shape index: {}]   ;;  %s634_s7 = inlined_call_operand.<no memory space> [shape: f32[1,1], index: 7, kind: input, shape index: {}]   ;;  %s635_s8 = inlined_call_operand.vmem [shape: f32[8,1], index: 8, kind: output, shape index: {}]  }
   0x1   :  { %15 = vsyncpa [#allocation6], 0  ;;  %s510_s27 = smov [#allocation5]   ;;  %s440_s9 = scalar_lea.hbm %s628_s1, 640 }
   0x2   :  { %s31_s28 = sshll.u32 %s510_s27, 4  ;;  %p441_p0 = scmp.ne.s32.totalorder %s628_s1, %s440_s9  ;;  %s32_s28 = int_to_ptr.vmem [resolvable:$true] %s31_s28 }
   0x3   :  { %p444_p1 = scmp.lt.u32.totalorder %s440_s9, %s628_s1 }
   0x5   :  { %p446_p2 = pnand %p444_p1, %p441_p0 }
   0x7   :  { %449 = shalt.err (!%p446_p2)
}
   0x8   :  { %s450_s14 = scalar_lea.vmem %s32_s28, 640  ;;  %p455_p4 = scmp.lt.s32.totalorder %s32_s28, %s32_s28 }
   0x9   :  { %p451_p3 = scmp.ne.s32.totalorder %s32_s28, %s450_s14  ;;  %p456_p5 = scmp.lt.s32.totalorder %s450_s14, %s450_s14 }
   0xb   :  { %p457_p6 = por %p456_p5, %p455_p4 }
   0xd   :  { %p458_p7 = pnand %p457_p6, %p451_p3 }
   0xf   :  { %461 = shalt.err (!%p458_p7)
}
  0x10   :  { %s511_s15 = smov 128   ;;  %s512_s16 = smov 8  }
  0x11   :  { %37 = dma.hbm_to_vmem [thread:$0]  %s628_s1, 640, %s32_s28, [#allocation6], %s511_s15, %s511_s15, %s512_s16  }
  0x12   :  { %s513_s19 = smov [#allocation3]   ;;  %s514_s21 = smov [#allocation7]  }
  0x13   :  { %s22_s20 = sshll.u32 %s513_s19, 4  ;;  %s45_s22 = sshll.u32 %s514_s21, 4  ;;  %s23_s20 = int_to_ptr.vmem [resolvable:$true] %s22_s20  ;;  %s46_s22 = int_to_ptr.vmem [resolvable:$true] %s45_s22 }
  0x14   :  { %s462_s25 = scalar_lea.hbm %s627_s0, 128 }
  0x15   :  { %p463_p8 = scmp.ne.s32.totalorder %s627_s0, %s462_s25  ;;  %p466_p9 = scmp.lt.u32.totalorder %s462_s25, %s627_s0 }
  0x17   :  { %p468_p10 = pnand %p466_p9, %p463_p8 }
  0x19   :  { %471 = shalt.err (!%p468_p10)
}
  0x1a   :  { %s472_s1 = scalar_lea.vmem %s23_s20, 128  ;;  %p477_p12 = scmp.lt.s32.totalorder %s23_s20, %s23_s20 }
  0x1b   :  { %p473_p11 = scmp.ne.s32.totalorder %s23_s20, %s472_s1  ;;  %p478_p13 = scmp.lt.s32.totalorder %s472_s1, %s472_s1 }
  0x1d   :  { %p479_p0 = por %p478_p13, %p477_p12 }
  0x1f   :  { %p480_p1 = pnand %p479_p0, %p473_p11 }
  0x21   :  { %483 = shalt.err (!%p480_p1)
}
  0x22   :  { %25 = dma.hbm_to_vmem [thread:$0]  %s627_s0, 128, %s23_s20, [#allocation4]  }
  0x23   :  { %s484_s12 = scalar_lea.hbm %s630_s3, 2048 }
  0x24   :  { %p485_p2 = scmp.ne.s32.totalorder %s630_s3, %s484_s12  ;;  %p488_p3 = scmp.lt.u32.totalorder %s484_s12, %s630_s3 }
  0x26   :  { %p490_p4 = pnand %p488_p3, %p485_p2 }
  0x28   :  { %493 = shalt.err (!%p490_p4)
}
  0x29   :  { %s494_s19 = scalar_lea.vmem %s46_s22, 2048  ;;  %p499_p6 = scmp.lt.s32.totalorder %s46_s22, %s46_s22 }
  0x2a   :  { %p495_p5 = scmp.ne.s32.totalorder %s46_s22, %s494_s19  ;;  %p500_p7 = scmp.lt.s32.totalorder %s494_s19, %s494_s19 }
  0x2c   :  { %p501_p8 = por %p500_p7, %p499_p6 }
  0x2e   :  { %p502_p9 = pnand %p501_p8, %p495_p5 }
  0x30   :  { %505 = shalt.err (!%p502_p9)
}
  0x31   :  { %51 = dma.hbm_to_vmem [thread:$0]  %s630_s3, 2048, %s46_s22, [#allocation6], %s511_s15, %s511_s15, %s512_s16  }
  0x32   :  { %506 = dma.done.wait [#allocation4], 128  }
  0x33   :  { %507 = vsyncadd [#allocation4], 4294967168 }
  0x34   :  { %508 = dma.done.wait [#allocation6], 2688  }
  0x35   :  { %509 = vsyncadd [#allocation6], 4294964608  ;;  %v515_v0 = vmov 0.0|0.0   ;;  %vm516_vm0 = vmmov 0   ;;  %v517_v1 = vmov 0.0   ;;  %v70_v2 = vld [vmem:[#allocation5] sm:$0xff]  ;;  %v259_v43 = vlaneseq }
  0x36   :  { %393 = vmatprep.subr.bf16.mxu0 %v515_v0  ;;  %355 = vmatprep.mubr.msk.f32.mxu0 %vm516_vm0, %v517_v1  ;;  %v71_v3 = vld [vmem:[#allocation5 + $0x8] sm:$0xff]  ;;  %v72_v4 = vld [vmem:[#allocation5 + $0x10] sm:$0xff]  ;;  %v73_v6 = vld [vmem:[#allocation5 + $0x18] sm:$0xff]  ;;  %vm86_vm1 = vcmask 1044480   ;;  %vm82_vm2 = vcmask 302080   ;;  %v518_v34 = vmov 33  }
  0x37   :  { %399 = vmatprep.subr.bf16.mxu1 %v515_v0  ;;  %390 = vmatprep.mubr.msk.f32.mxu1 %vm516_vm0, %v517_v1  ;;  %v394_v5 = vpack.c.bf16 %v71_v3, %v70_v2  ;;  %v161_v7 = vld [vmem:[#allocation7] sm:$0xff]  ;;  %v162_v8 = vld [vmem:[#allocation7 + $0x8] sm:$0xff]  ;;  %v163_v9 = vld [vmem:[#allocation7 + $0x10] sm:$0xff]  ;;  %v397_v10 = vpack.c.bf16 %v73_v6, %v72_v4  ;;  %v519_v35 = vmov 35   ;;  %v520_v36 = vmov 34  }
  0x38   :  { %v400_v11 = vpack.c.bf16 %v162_v8, %v161_v7  ;;  %v164_v12 = vld [vmem:[#allocation7 + $0x18] sm:$0xff]  ;;  %v165_v14 = vld [vmem:[#allocation7 + $0x20] sm:$0xff]  ;;  %v166_v15 = vld [vmem:[#allocation7 + $0x28] sm:$0xff]  ;;  %435 = vset.pattern.permute.xlu0 %v518_v34  ;;  %437 = vset.pattern.permute.xlu1 %v519_v35  ;;  %v521_v37 = vmov 36   ;;  %v260_v44 = vshrl.u32 %v259_v43, 7  ;;  %vm309_vm3 = vcmask 7168  }
  0x39   :  { %395 = vmatpush3.bf16.msra.mxu0 %v394_v5  ;;  %v403_v13 = vpack.c.bf16 %v164_v12, %v163_v9  ;;  %v74_v16 = vld [vmem:[#allocation5 + $0x20] sm:$0x1f]  ;;  %v69_v17 = vld [vmem:[#allocation3] sm:$0xff]  ;;  %v406_v18 = vpack.c.bf16 %v166_v15, %v165_v14  ;;  %v169_v22 = vld [vmem:[#allocation7 + $0x40] sm:$0xff]  ;;  %v307_v9 = vstv %s634_s7 }
  0x3a   :  { %396 = vmatprep.subr.bf16.mxu0 %v515_v0  ;;  %401 = vmatpush3.bf16.msra.mxu1 %v400_v11  ;;  %v167_v19 = vld [vmem:[#allocation7 + $0x30] sm:$0xff]  ;;  %v168_v20 = vld [vmem:[#allocation7 + $0x38] sm:$0xff]  ;;  %v170_v23 = vld [vmem:[#allocation7 + $0x48] sm:$0xff]  ;;  %v261_v45 = vsub.s32 0, %v260_v44  ;;  %v271_v48 = vsub.s32 1, %v260_v44  ;;  %v281_v51 = vsub.s32 2, %v260_v44 }
  0x3b   :  { %402 = vmatprep.subr.bf16.mxu1 %v515_v0  ;;  %v409_v21 = vpack.c.bf16 %v168_v20, %v167_v19  ;;  %v412_v24 = vpack.c.bf16 %v170_v23, %v169_v22  ;;  %v171_v25 = vld [vmem:[#allocation7 + $0x50] sm:$0xff]  ;;  %v172_v26 = vld [vmem:[#allocation7 + $0x58] sm:$0xff]  ;;  %v173_v28 = vld [vmem:[#allocation7 + $0x60] sm:$0xff]  ;;  %256 = vperm.xlu0 %435, %v69_v17   ;;  %v291_v53 = vsub.s32 3, %v260_v44 }
  0x3c   :  { %v415_v27 = vpack.c.bf16 %v172_v26, %v171_v25  ;;  %v174_v29 = vld [vmem:[#allocation7 + $0x68] sm:$0xff]  ;;  %v175_v31 = vld [vmem:[#allocation7 + $0x70] sm:$0xff]  ;;  %v176_v32 = vld [vmem:[#allocation7 + $0x78] sm:$0xff]  ;;  %276 = vperm.xlu1 %437, %v69_v17  }
  0x3d   :  { %398 = vmatpush3.bf16.msra.mxu0 %v397_v10  ;;  %v418_v30 = vpack.c.bf16 %v174_v29, %v173_v28  ;;  %v421_v33 = vpack.c.bf16 %v176_v32, %v175_v31  ;;  %v317_v38 = vld [vmem:[%s629_s2] ss:$0 sm:$0xff] }
  0x3e   :  { %353 = vmatprep.subr.mxu0 %v517_v1  ;;  %404 = vmatpush3.bf16.msra.mxu1 %v403_v13  ;;  %v254_v47 = vld [vmem:[%s631_s4] sm:$0xf] }
  0x3f   :  { %405 = vmatprep.subr.bf16.mxu1 %v515_v0  ;;  %436 = vset.pattern.permute.xlu0 %v520_v36  ;;  %v262_v49 = vrot.slane %v254_v47, %v261_v45  ;;  %v272_v52 = vrot.slane %v254_v47, %v271_v48  ;;  %v320_v54 = vld [vmem:[%s632_s5] ss:$0 sm:$0xff]  ;;  %v282_v59 = vrot.slane %v254_v47, %v281_v51 }
  0x40   :  { %438 = vset.pattern.permute.xlu1 %v521_v37  ;;  %266 = vperm.xlu0 %436, %v69_v17   ;;  %v292_v62 = vrot.slane %v254_v47, %v291_v53  ;;  %v321_v6 = vld [vmem:[%s633_s6] ss:$0 sm:$0xff] }
  0x41   :  { %354 = vmatpush3.msk.msra.mxu0 %vm86_vm1, %v74_v16  ;;  %286 = vperm.xlu1 %438, %v69_v17  }
  0x42   :  { %356 = vmatmul.mubr.msk.f32.vlgmr.msra.gmra.mrb[0].mxu0 %vm82_vm2, %v69_v17  ;;  %407 = vmatpush3.bf16.msra.mxu1 %v406_v18 }
  0x43   :  { %408 = vmatprep.subr.bf16.mxu1 %v515_v0 }
  0x44   :  { %439 = vset.pattern.permute.xlu0 %v521_v37 }
  0x46   :  { %410 = vmatpush3.bf16.msra.mxu1 %v409_v21 }
  0x47   :  { %411 = vmatprep.subr.bf16.mxu1 %v515_v0 }
  0x4a   :  { %413 = vmatpush3.bf16.msra.mxu1 %v412_v24 }
  0x4b   :  { %414 = vmatprep.subr.bf16.mxu1 %v515_v0 }
  0x4e   :  { %416 = vmatpush3.bf16.msra.mxu1 %v415_v27 }
  0x4f   :  { %417 = vmatprep.subr.bf16.mxu1 %v515_v0 }
  0x52   :  { %419 = vmatpush3.bf16.msra.mxu1 %v418_v30 }
  0x53   :  { %420 = vmatprep.subr.bf16.mxu1 %v515_v0 }
  0x56   :  { %422 = vmatpush3.bf16.msra.mxu1 %v421_v33 }
  0xba   :  { %v257_v46 = vpop.permute.xlu0 %256 }
  0xbb   :  { %v277_v50 = vpop.permute.xlu1 %276  ;;  %v263_v56 = vmul.f32 %v262_v49, %v257_v46 }
  0xbc   :  { %v283_v1 = vmul.f32 %v282_v59, %v277_v50 }
  0xbf   :  { %v267_v55 = vpop.permute.xlu0 %266 }
  0xc0   :  { %v273_v61 = vmul.f32 %v272_v52, %v267_v55  ;;  %v287_v63 = vpop.permute.xlu1 %286 }
  0xc1   :  { %v293_v3 = vmul.f32 %v292_v62, %v287_v63 }
 0x115   :  { %v156_v39 = vpop.f32.mrb[0].mxu0 }
 0x116   :  { %v157_v40 = vadd.f32 %v317_v38, %v156_v39  ;;  %v357_v41 = vpop.f32.mrb[1].mxu0 }
 0x118   :  { %v160_v42 = vmax.f32 %v157_v40, 0.0 }
 0x11a   :  { %391 = vmatmul.mubr.f32.vlgmr.msra.gmra.mrb[0].mxu1 %v160_v42 }
 0x1ed   :  { %v250_v57 = vpop.f32.mrb[0].mxu1 }
 0x1ee   :  { %v251_v58 = vadd.f32 %v320_v54, %v250_v57  ;;  %v392_v60 = vpop.f32.mrb[1].mxu1 }
 0x1f0   :  { %v264_v0 = vadd.f32 %v263_v56, %v251_v58 }
 0x1f2   :  { %v274_v2 = vadd.f32 %v273_v61, %v264_v0 }
 0x1f4   :  { %v284_v4 = vadd.f32 %v283_v1, %v274_v2 }
 0x1f6   :  { %v294_v5 = vadd.f32 %v293_v3, %v284_v4 }
 0x1f8   :  { %v295_v7 = vmax.f32 %v294_v5, 0.0 }
 0x1fa   :  { %v303_v8 = vmul.f32 %v321_v6, %v295_v7 }
 0x1fc   :  { %304 = vadd.xlane.f32.xlu1 %v303_v8 }
 0x289   :  { %v305_v10 = vpop.xlane.xlu1 %304 }
 0x28a   :  { %v308_v11 = vadd.f32 %v307_v9, %v305_v10 }
 0x28c   :  { %310 = vst.msk [vmem:[%s635_s8] sm:$0xff] %vm309_vm3, %v308_v11 }
 0x28d   :  { %315 = vsyncpa [#allocation4], 1 }
 0x28e   :  { %316 = vsyncpa [#allocation6], 1 }

</bundles_post_ra>
